<compile_context>
chip_gen: v5e
topology: v5e:2x2
jax: 0.10.0
libtpu: 0.0.40
codegen_flags: <defaults>
</compile_context>

<pallas_src>
import functools

import numpy as np
import jax
import jax.numpy as jnp
from jax import lax
from jax.experimental import pallas as pl
from jax.experimental.pallas import tpu as pltpu

_NEG = -1e30  # finite stand-in for -inf: avoids inf-inf -> NaN on masked/padded lanes


def _clip_nce_kernel(scores_ref, labels_ref, qmask_ref, vvalid_ref,   # inputs
                     loss_ref,                                        # output (1,1)
                     m_den, l_den, m_nom, l_nom,                      # VMEM scratch (1,V)
                     *, n_queries, n_vids, block_q):
    i = pl.program_id(0)
    last = pl.num_programs(0) - 1

    @pl.when(i == 0)
    def _init():
        loss_ref[...] = jnp.zeros(loss_ref.shape, jnp.float32)
        m_den[...] = jnp.full(m_den.shape, _NEG, jnp.float32)
        l_den[...] = jnp.zeros(l_den.shape, jnp.float32)
        m_nom[...] = jnp.full(m_nom.shape, _NEG, jnp.float32)
        l_nom[...] = jnp.zeros(l_nom.shape, jnp.float32)

    s_raw = scores_ref[...].astype(jnp.float32)            # (TQ, V)
    labels = labels_ref[...]                               # (TQ, 1) int32
    qmask = qmask_ref[...]                                 # (TQ, V) f32 membership mask
    tq, v_dim = s_raw.shape

    # Row validity handles Q not divisible by block_q (padded rows act like -inf).
    row_ids = i * block_q + lax.broadcasted_iota(jnp.int32, (tq, 1), 0)
    row_valid = row_ids < n_queries                        # (TQ, 1) bool
    s = jnp.where(row_valid, s_raw, jnp.float32(_NEG))

    # -------- t2v: per-row max-subtracted logsumexp + one-hot gather s[q, labels[q]]
    row_max = jnp.max(s, axis=-1, keepdims=True)
    row_lse = row_max + jnp.log(jnp.sum(jnp.exp(s - row_max), axis=-1, keepdims=True))
    col_ids = lax.broadcasted_iota(jnp.int32, (tq, v_dim), 1)
    onehot = (col_ids == labels).astype(jnp.float32)
    nom_row = jnp.sum(s * onehot, axis=-1, keepdims=True)
    t2v_part = jnp.sum(jnp.where(row_valid, row_lse - nom_row, 0.0))
    loss_ref[...] += t2v_part / jnp.float32(n_queries)

    # -------- v2t: online (streaming) column-wise logsumexp accumulators
    def online_update(m_ref, l_ref, vals):
        bmax = jnp.max(vals, axis=0, keepdims=True)         # (1, V)
        new_m = jnp.maximum(m_ref[...], bmax)
        l_ref[...] = (l_ref[...] * jnp.exp(m_ref[...] - new_m)
                      + jnp.sum(jnp.exp(vals - new_m), axis=0, keepdims=True))
        m_ref[...] = new_m

    online_update(m_den, l_den, s)                                        # all queries
    online_update(m_nom, l_nom, jnp.where(qmask > 0, s, jnp.float32(_NEG)))  # labelled queries

    @pl.when(i == last)
    def _finalize():
        den_v = m_den[...] + jnp.log(l_den[...])            # (1, V)
        nom_v = m_nom[...] + jnp.log(l_nom[...])
        # v not in label_dict contributes exactly 0 (matches the torch.zeros init).
        v2t = jnp.sum(vvalid_ref[...] * (den_v - nom_v))
        loss_ref[...] += v2t / jnp.float32(n_vids)


def clip_nce_pallas(labels, label_dict, q2ctx_scores, contexts=None, queries=None,
                    *, block_q=128):
    """labels: (Q,) int; label_dict: {video_idx: [query_idx, ...]}; q2ctx_scores: (Q, V)."""
    del contexts, queries  # unused by the reference forward
    scores = q2ctx_scores
    q_dim, v_dim = scores.shape

    block_q = max(8, min(int(block_q), -(-q_dim // 8) * 8))   # multiple of 8, not >> Q
    n_steps = -(-q_dim // block_q)
    q_pad = n_steps * block_q

    labels = jnp.asarray(labels, jnp.int32).reshape(q_dim, 1)

    # Dense membership mask / per-video validity, built host-side from the static dict.
    qmask_np = np.zeros((q_pad, v_dim), np.float32)
    vvalid_np = np.zeros((1, v_dim), np.float32)
    for v, qs in label_dict.items():
        vvalid_np[0, int(v)] = 1.0
        for qq in qs:
            qmask_np[int(qq), int(v)] = 1.0
    qmask = jnp.asarray(qmask_np)
    vvalid = jnp.asarray(vvalid_np)

    if q_pad != q_dim:
        scores = jnp.pad(scores, ((0, q_pad - q_dim), (0, 0)))
        labels = jnp.pad(labels, ((0, q_pad - q_dim), (0, 0)))

    kernel = functools.partial(_clip_nce_kernel, n_queries=q_dim, n_vids=v_dim,
                               block_q=block_q)

    out = pl.pallas_call(
        kernel,
        out_shape=jax.ShapeDtypeStruct((1, 1), jnp.float32),
        grid_spec=pltpu.PrefetchScalarGridSpec(
            num_scalar_prefetch=0,
            grid=(n_steps,),
            in_specs=[
                pl.BlockSpec((block_q, v_dim), lambda i: (i, 0)),   # scores tile
                pl.BlockSpec((block_q, 1), lambda i: (i, 0)),       # labels tile
                pl.BlockSpec((block_q, v_dim), lambda i: (i, 0)),   # membership mask tile
                pl.BlockSpec((1, v_dim), lambda i: (0, 0)),         # per-video validity
            ],
            out_specs=pl.BlockSpec((1, 1), lambda i: (0, 0)),       # resident accumulator
            scratch_shapes=[pltpu.VMEM((1, v_dim), jnp.float32)] * 4,
        ),
        compiler_params=pltpu.CompilerParams(
            dimension_semantics=("arbitrary",)),                    # streaming accumulation
    )(scores, labels, qmask, vvalid)
    return out[0, 0]


def clip_nce_ref(labels, label_dict, q2ctx_scores):
    """Pure-JAX mirror of the PyTorch forward (reduction='mean')."""
    scores = q2ctx_scores.astype(jnp.float32)
    q_dim, v_dim = scores.shape
    t2v_nom = scores[jnp.arange(q_dim), jnp.asarray(labels)]
    t2v_den = jax.nn.logsumexp(scores, axis=1)
    loss = jnp.mean(t2v_den - t2v_nom)
    v2t_nom = jnp.zeros((v_dim,), jnp.float32)
    v2t_den = jnp.zeros((v_dim,), jnp.float32)
    for v, qs in label_dict.items():
        v2t_nom = v2t_nom.at[int(v)].set(jax.nn.logsumexp(scores[jnp.asarray(qs), int(v)]))
        v2t_den = v2t_den.at[int(v)].set(jax.nn.logsumexp(scores[:, int(v)]))
    return loss + jnp.mean(v2t_den - v2t_nom)


if __name__ == "__main__":
    key = jax.random.PRNGKey(0)
    Q, V = 12, 8                                   # query batch, video batch
    k1, k2 = jax.random.split(key)
    scores = jax.random.normal(k1, (Q, V), jnp.float32) * 3.0
    labels_np = np.asarray(jax.random.randint(k2, (Q,), 0, V))
    labels = jnp.asarray(labels_np, jnp.int32)

    # label_dict: video index -> list of query indices labelled with that video.
    label_dict = {int(v): [int(q) for q in np.nonzero(labels_np == v)[0]]
                  for v in np.unique(labels_np)}

    out = clip_nce_pallas(labels, label_dict, scores, block_q=8)  # 2 grid steps + padding path
    out = jax.block_until_ready(out)

    ref = clip_nce_ref(labels, label_dict, scores)
    assert jnp.allclose(out, ref, rtol=1e-4, atol=1e-4), (float(out), float(ref))
    print("KERNEL_OK")
</pallas_src>

<mosaic_0001>
module attributes {stable_mosaic.version = 11 : i64} {
  func.func @_clip_nce_kernel(%arg0: i32, %arg1: memref<8x8xf32, #tpu.memory_space<vmem>>, %arg2: memref<8x1xi32, #tpu.memory_space<vmem>>, %arg3: memref<8x8xf32, #tpu.memory_space<vmem>>, %arg4: memref<1x8xf32, #tpu.memory_space<vmem>>, %arg5: memref<1x1xf32, #tpu.memory_space<vmem>>, %arg6: memref<1x8xf32, #tpu.memory_space<vmem>>, %arg7: memref<1x8xf32, #tpu.memory_space<vmem>>, %arg8: memref<1x8xf32, #tpu.memory_space<vmem>>, %arg9: memref<1x8xf32, #tpu.memory_space<vmem>>) attributes {dimension_semantics = [#tpu.dimension_semantics<arbitrary>], iteration_bounds = array<i64: 2>, scalar_prefetch = 0 : i64, scratch_operands = 4 : i64, tpu.core_type = #tpu.core_type<tc>, window_params = [{transform_indices = @transform_0, window_bounds = array<i64: 8, 8>}, {transform_indices = @transform_1, window_bounds = array<i64: 8, 1>}, {transform_indices = @transform_2, window_bounds = array<i64: 8, 8>}, {pipeline_mode = #tpu.pipeline_mode<synchronous>, transform_indices = @transform_3, window_bounds = array<i64: 1, 8>}, {pipeline_mode = #tpu.pipeline_mode<synchronous>, transform_indices = @transform_4, window_bounds = array<i64: 1, 1>}]} {
    %c0_i32 = arith.constant 0 : i32
    %0 = arith.cmpi eq, %arg0, %c0_i32 : i32
    %1 = arith.extui %0 : i1 to i32
    %c0_i32_0 = arith.constant 0 : i32
    %2 = arith.cmpi ne, %1, %c0_i32_0 : i32
    scf.if %2 {
      %cst_43 = arith.constant 0.000000e+00 : f32
      %86 = vector.broadcast %cst_43 : f32 to vector<1x1xf32>
      %c0_44 = arith.constant 0 : index
      %c0_45 = arith.constant 0 : index
      %87 = vector.load %arg5[%c0_44, %c0_45] : memref<1x1xf32, #tpu.memory_space<vmem>>, vector<1x1xf32>
      tpu.vector_store %arg5[%c0_44, %c0_45], %86 {strides = array<i32>} : memref<1x1xf32, #tpu.memory_space<vmem>>, vector<1x1xf32>,
      %cst_46 = arith.constant -1.000000e+30 : f32
      %88 = vector.broadcast %cst_46 : f32 to vector<1x8xf32>
      %c0_47 = arith.constant 0 : index
      %c0_48 = arith.constant 0 : index
      %89 = vector.load %arg6[%c0_47, %c0_48] : memref<1x8xf32, #tpu.memory_space<vmem>>, vector<1x8xf32>
      tpu.vector_store %arg6[%c0_47, %c0_48], %88 {strides = array<i32>} : memref<1x8xf32, #tpu.memory_space<vmem>>, vector<1x8xf32>,
      %cst_49 = arith.constant 0.000000e+00 : f32
      %90 = vector.broadcast %cst_49 : f32 to vector<1x8xf32>
      %c0_50 = arith.constant 0 : index
      %c0_51 = arith.constant 0 : index
      %91 = vector.load %arg7[%c0_50, %c0_51] : memref<1x8xf32, #tpu.memory_space<vmem>>, vector<1x8xf32>
      tpu.vector_store %arg7[%c0_50, %c0_51], %90 {strides = array<i32>} : memref<1x8xf32, #tpu.memory_space<vmem>>, vector<1x8xf32>,
      %cst_52 = arith.constant -1.000000e+30 : f32
      %92 = vector.broadcast %cst_52 : f32 to vector<1x8xf32>
      %c0_53 = arith.constant 0 : index
      %c0_54 = arith.constant 0 : index
      %93 = vector.load %arg8[%c0_53, %c0_54] : memref<1x8xf32, #tpu.memory_space<vmem>>, vector<1x8xf32>
      tpu.vector_store %arg8[%c0_53, %c0_54], %92 {strides = array<i32>} : memref<1x8xf32, #tpu.memory_space<vmem>>, vector<1x8xf32>,
      %cst_55 = arith.constant 0.000000e+00 : f32
      %94 = vector.broadcast %cst_55 : f32 to vector<1x8xf32>
      %c0_56 = arith.constant 0 : index
      %c0_57 = arith.constant 0 : index
      %95 = vector.load %arg9[%c0_56, %c0_57] : memref<1x8xf32, #tpu.memory_space<vmem>>, vector<1x8xf32>
      tpu.vector_store %arg9[%c0_56, %c0_57], %94 {strides = array<i32>} : memref<1x8xf32, #tpu.memory_space<vmem>>, vector<1x8xf32>,
    } else {
    }
    %c0 = arith.constant 0 : index
    %c0_1 = arith.constant 0 : index
    %3 = vector.load %arg1[%c0, %c0_1] : memref<8x8xf32, #tpu.memory_space<vmem>>, vector<8x8xf32>
    %c0_2 = arith.constant 0 : index
    %c0_3 = arith.constant 0 : index
    %4 = vector.load %arg2[%c0_2, %c0_3] : memref<8x1xi32, #tpu.memory_space<vmem>>, vector<8x1xi32>
    %c0_4 = arith.constant 0 : index
    %c0_5 = arith.constant 0 : index
    %5 = vector.load %arg3[%c0_4, %c0_5] : memref<8x8xf32, #tpu.memory_space<vmem>>, vector<8x8xf32>
    %c8_i32 = arith.constant 8 : i32
    %6 = arith.muli %arg0, %c8_i32 : i32
    %7 = tpu.iota {dimensions = array<i32: 0>} : vector<8x1xi32>
    %8 = vector.broadcast %6 : i32 to vector<8x1xi32>
    %9 = arith.addi %8, %7 : vector<8x1xi32>
    %c12_i32 = arith.constant 12 : i32
    %10 = vector.broadcast %c12_i32 : i32 to vector<8x1xi32>
    %11 = arith.cmpi slt, %9, %10 : vector<8x1xi32>
    %cst = arith.constant -1.000000e+30 : f32
    %12 = vector.shape_cast %11 : vector<8x1xi1> to vector<8x1xi1>
    %13 = vector.broadcast %12 : vector<8x1xi1> to vector<8x8xi1>
    %14 = vector.broadcast %cst : f32 to vector<8x8xf32>
    %15 = arith.select %13, %3, %14 : vector<8x8xi1>, vector<8x8xf32>
    %cst_6 = arith.constant dense<0xFF800000> : vector<8xf32>
    %16 = vector.multi_reduction <maximumf>, %15, %cst_6 [1] : vector<8x8xf32> to vector<8xf32>
    %17 = vector.shape_cast %16 : vector<8xf32> to vector<8x1xf32>
    %18 = vector.broadcast %17 : vector<8x1xf32> to vector<8x8xf32>
    %19 = arith.subf %15, %18 : vector<8x8xf32>
    %20 = math.exp %19 : vector<8x8xf32>
    %cst_7 = arith.constant dense<0.000000e+00> : vector<8xf32>
    %21 = vector.multi_reduction <add>, %20, %cst_7 [1] : vector<8x8xf32> to vector<8xf32>
    %22 = vector.shape_cast %21 : vector<8xf32> to vector<8x1xf32>
    %23 = math.log %22 : vector<8x1xf32>
    %24 = arith.addf %17, %23 : vector<8x1xf32>
    %25 = tpu.iota {dimensions = array<i32: 1>} : vector<8x8xi32>
    %26 = vector.broadcast %4 : vector<8x1xi32> to vector<8x8xi32>
    %27 = arith.cmpi eq, %25, %26 : vector<8x8xi32>
    %28 = arith.extui %27 : vector<8x8xi1> to vector<8x8xi32>
    %29 = arith.sitofp %28 : vector<8x8xi32> to vector<8x8xf32>
    %30 = arith.mulf %15, %29 : vector<8x8xf32>
    %cst_8 = arith.constant dense<0.000000e+00> : vector<8xf32>
    %31 = vector.multi_reduction <add>, %30, %cst_8 [1] : vector<8x8xf32> to vector<8xf32>
    %32 = vector.shape_cast %31 : vector<8xf32> to vector<8x1xf32>
    %33 = arith.subf %24, %32 : vector<8x1xf32>
    %cst_9 = arith.constant 0.000000e+00 : f32
    %34 = vector.broadcast %cst_9 : f32 to vector<8x1xf32>
    %35 = arith.select %11, %33, %34 : vector<8x1xi1>, vector<8x1xf32>
    %36 = vector.shape_cast %35 : vector<8x1xf32> to vector<1x8x1xf32>
    %cst_10 = arith.constant dense<0.000000e+00> : vector<1xf32>
    %37 = vector.multi_reduction <add>, %36, %cst_10 [1, 2] : vector<1x8x1xf32> to vector<1xf32>
    %38 = vector.shape_cast %37 : vector<1xf32> to vector<1x1x1xf32>
    %39 = vector.extract %38[0, 0, 0] : f32 from vector<1x1x1xf32>
    %c0_11 = arith.constant 0 : index
    %c0_12 = arith.constant 0 : index
    %40 = vector.load %arg5[%c0_11, %c0_12] : memref<1x1xf32, #tpu.memory_space<vmem>>, vector<1x1xf32>
    %cst_13 = arith.constant 1.200000e+01 : f32
    %41 = arith.divf %39, %cst_13 : f32
    %42 = vector.broadcast %41 : f32 to vector<1x1xf32>
    %43 = arith.addf %40, %42 : vector<1x1xf32>
    %c0_14 = arith.constant 0 : index
    %c0_15 = arith.constant 0 : index
    %44 = vector.load %arg5[%c0_14, %c0_15] : memref<1x1xf32, #tpu.memory_space<vmem>>, vector<1x1xf32>
    tpu.vector_store %arg5[%c0_14, %c0_15], %43 {strides = array<i32>} : memref<1x1xf32, #tpu.memory_space<vmem>>, vector<1x1xf32>,
    %cst_16 = arith.constant dense<0xFF800000> : vector<8xf32>
    %45 = vector.multi_reduction <maximumf>, %15, %cst_16 [0] : vector<8x8xf32> to vector<8xf32>
    %46 = vector.shape_cast %45 : vector<8xf32> to vector<1x8xf32>
    %c0_17 = arith.constant 0 : index
    %c0_18 = arith.constant 0 : index
    %47 = vector.load %arg6[%c0_17, %c0_18] : memref<1x8xf32, #tpu.memory_space<vmem>>, vector<1x8xf32>
    %48 = arith.maximumf %47, %46 : vector<1x8xf32>
    %c0_19 = arith.constant 0 : index
    %c0_20 = arith.constant 0 : index
    %49 = vector.load %arg7[%c0_19, %c0_20] : memref<1x8xf32, #tpu.memory_space<vmem>>, vector<1x8xf32>
    %c0_21 = arith.constant 0 : index
    %c0_22 = arith.constant 0 : index
    %50 = vector.load %arg6[%c0_21, %c0_22] : memref<1x8xf32, #tpu.memory_space<vmem>>, vector<1x8xf32>
    %51 = arith.subf %50, %48 : vector<1x8xf32>
    %52 = math.exp %51 : vector<1x8xf32>
    %53 = arith.mulf %49, %52 : vector<1x8xf32>
    %54 = vector.broadcast %48 : vector<1x8xf32> to vector<8x8xf32>
    %55 = arith.subf %15, %54 : vector<8x8xf32>
    %56 = math.exp %55 : vector<8x8xf32>
    %cst_23 = arith.constant dense<0.000000e+00> : vector<8xf32>
    %57 = vector.multi_reduction <add>, %56, %cst_23 [0] : vector<8x8xf32> to vector<8xf32>
    %58 = vector.shape_cast %57 : vector<8xf32> to vector<1x8xf32>
    %59 = arith.addf %53, %58 : vector<1x8xf32>
    %c0_24 = arith.constant 0 : index
    %c0_25 = arith.constant 0 : index
    %60 = vector.load %arg7[%c0_24, %c0_25] : memref<1x8xf32, #tpu.memory_space<vmem>>, vector<1x8xf32>
    tpu.vector_store %arg7[%c0_24, %c0_25], %59 {strides = array<i32>} : memref<1x8xf32, #tpu.memory_space<vmem>>, vector<1x8xf32>,
    %c0_26 = arith.constant 0 : index
    %c0_27 = arith.constant 0 : index
    %61 = vector.load %arg6[%c0_26, %c0_27] : memref<1x8xf32, #tpu.memory_space<vmem>>, vector<1x8xf32>
    tpu.vector_store %arg6[%c0_26, %c0_27], %48 {strides = array<i32>} : memref<1x8xf32, #tpu.memory_space<vmem>>, vector<1x8xf32>,
    %cst_28 = arith.constant 0.000000e+00 : f32
    %62 = vector.broadcast %cst_28 : f32 to vector<8x8xf32>
    %63 = arith.cmpf ogt, %5, %62 : vector<8x8xf32>
    %cst_29 = arith.constant -1.000000e+30 : f32
    %64 = vector.broadcast %cst_29 : f32 to vector<8x8xf32>
    %65 = arith.select %63, %15, %64 : vector<8x8xi1>, vector<8x8xf32>
    %cst_30 = arith.constant dense<0xFF800000> : vector<8xf32>
    %66 = vector.multi_reduction <maximumf>, %65, %cst_30 [0] : vector<8x8xf32> to vector<8xf32>
    %67 = vector.shape_cast %66 : vector<8xf32> to vector<1x8xf32>
    %c0_31 = arith.constant 0 : index
    %c0_32 = arith.constant 0 : index
    %68 = vector.load %arg8[%c0_31, %c0_32] : memref<1x8xf32, #tpu.memory_space<vmem>>, vector<1x8xf32>
    %69 = arith.maximumf %68, %67 : vector<1x8xf32>
    %c0_33 = arith.constant 0 : index
    %c0_34 = arith.constant 0 : index
    %70 = vector.load %arg9[%c0_33, %c0_34] : memref<1x8xf32, #tpu.memory_space<vmem>>, vector<1x8xf32>
    %c0_35 = arith.constant 0 : index
    %c0_36 = arith.constant 0 : index
    %71 = vector.load %arg8[%c0_35, %c0_36] : memref<1x8xf32, #tpu.memory_space<vmem>>, vector<1x8xf32>
    %72 = arith.subf %71, %69 : vector<1x8xf32>
    %73 = math.exp %72 : vector<1x8xf32>
    %74 = arith.mulf %70, %73 : vector<1x8xf32>
    %75 = vector.broadcast %69 : vector<1x8xf32> to vector<8x8xf32>
    %76 = arith.subf %65, %75 : vector<8x8xf32>
    %77 = math.exp %76 : vector<8x8xf32>
    %cst_37 = arith.constant dense<0.000000e+00> : vector<8xf32>
    %78 = vector.multi_reduction <add>, %77, %cst_37 [0] : vector<8x8xf32> to vector<8xf32>
    %79 = vector.shape_cast %78 : vector<8xf32> to vector<1x8xf32>
    %80 = arith.addf %74, %79 : vector<1x8xf32>
    %c0_38 = arith.constant 0 : index
    %c0_39 = arith.constant 0 : index
    %81 = vector.load %arg9[%c0_38, %c0_39] : memref<1x8xf32, #tpu.memory_space<vmem>>, vector<1x8xf32>
    tpu.vector_store %arg9[%c0_38, %c0_39], %80 {strides = array<i32>} : memref<1x8xf32, #tpu.memory_space<vmem>>, vector<1x8xf32>,
    %c0_40 = arith.constant 0 : index
    %c0_41 = arith.constant 0 : index
    %82 = vector.load %arg8[%c0_40, %c0_41] : memref<1x8xf32, #tpu.memory_space<vmem>>, vector<1x8xf32>
    tpu.vector_store %arg8[%c0_40, %c0_41], %69 {strides = array<i32>} : memref<1x8xf32, #tpu.memory_space<vmem>>, vector<1x8xf32>,
    %c1_i32 = arith.constant 1 : i32
    %83 = arith.cmpi eq, %arg0, %c1_i32 : i32
    %84 = arith.extui %83 : i1 to i32
    %c0_i32_42 = arith.constant 0 : i32
    %85 = arith.cmpi ne, %84, %c0_i32_42 : i32
    scf.if %85 {
      %c0_43 = arith.constant 0 : index
      %c0_44 = arith.constant 0 : index
      %86 = vector.load %arg6[%c0_43, %c0_44] : memref<1x8xf32, #tpu.memory_space<vmem>>, vector<1x8xf32>
      %c0_45 = arith.constant 0 : index
      %c0_46 = arith.constant 0 : index
      %87 = vector.load %arg7[%c0_45, %c0_46] : memref<1x8xf32, #tpu.memory_space<vmem>>, vector<1x8xf32>
      %88 = math.log %87 : vector<1x8xf32>
      %89 = arith.addf %86, %88 : vector<1x8xf32>
      %c0_47 = arith.constant 0 : index
      %c0_48 = arith.constant 0 : index
      %90 = vector.load %arg8[%c0_47, %c0_48] : memref<1x8xf32, #tpu.memory_space<vmem>>, vector<1x8xf32>
      %c0_49 = arith.constant 0 : index
      %c0_50 = arith.constant 0 : index
      %91 = vector.load %arg9[%c0_49, %c0_50] : memref<1x8xf32, #tpu.memory_space<vmem>>, vector<1x8xf32>
      %92 = math.log %91 : vector<1x8xf32>
      %93 = arith.addf %90, %92 : vector<1x8xf32>
      %c0_51 = arith.constant 0 : index
      %c0_52 = arith.constant 0 : index
      %94 = vector.load %arg4[%c0_51, %c0_52] : memref<1x8xf32, #tpu.memory_space<vmem>>, vector<1x8xf32>
      %95 = arith.subf %89, %93 : vector<1x8xf32>
      %96 = arith.mulf %94, %95 : vector<1x8xf32>
      %97 = vector.shape_cast %96 : vector<1x8xf32> to vector<1x1x8xf32>
      %cst_53 = arith.constant dense<0.000000e+00> : vector<1xf32>
      %98 = vector.multi_reduction <add>, %97, %cst_53 [1, 2] : vector<1x1x8xf32> to vector<1xf32>
      %99 = vector.shape_cast %98 : vector<1xf32> to vector<1x1x1xf32>
      %100 = vector.extract %99[0, 0, 0] : f32 from vector<1x1x1xf32>
      %c0_54 = arith.constant 0 : index
      %c0_55 = arith.constant 0 : index
      %101 = vector.load %arg5[%c0_54, %c0_55] : memref<1x1xf32, #tpu.memory_space<vmem>>, vector<1x1xf32>
      %cst_56 = arith.constant 8.000000e+00 : f32
      %102 = arith.divf %100, %cst_56 : f32
      %103 = vector.broadcast %102 : f32 to vector<1x1xf32>
      %104 = arith.addf %101, %103 : vector<1x1xf32>
      %c0_57 = arith.constant 0 : index
      %c0_58 = arith.constant 0 : index
      %105 = vector.load %arg5[%c0_57, %c0_58] : memref<1x1xf32, #tpu.memory_space<vmem>>, vector<1x1xf32>
      tpu.vector_store %arg5[%c0_57, %c0_58], %104 {strides = array<i32>} : memref<1x1xf32, #tpu.memory_space<vmem>>, vector<1x1xf32>,
    } else {
    }
    return
  }
  func.func @transform_0(%arg0: i32) -> (i32, i32) {
    %c0_i32 = arith.constant 0 : i32
    %c0_i32_0 = arith.constant 0 : i32
    return %arg0, %c0_i32 : i32, i32
  }
  func.func @transform_1(%arg0: i32) -> (i32, i32) {
    %c0_i32 = arith.constant 0 : i32
    %c0_i32_0 = arith.constant 0 : i32
    return %arg0, %c0_i32 : i32, i32
  }
  func.func @transform_2(%arg0: i32) -> (i32, i32) {
    %c0_i32 = arith.constant 0 : i32
    %c0_i32_0 = arith.constant 0 : i32
    return %arg0, %c0_i32 : i32, i32
  }
  func.func @transform_3(%arg0: i32) -> (i32, i32) {
    %c0_i32 = arith.constant 0 : i32
    %c0_i32_0 = arith.constant 0 : i32
    %c0_i32_1 = arith.constant 0 : i32
    return %c0_i32, %c0_i32_0 : i32, i32
  }
  func.func @transform_4(%arg0: i32) -> (i32, i32) {
    %c0_i32 = arith.constant 0 : i32
    %c0_i32_0 = arith.constant 0 : i32
    %c0_i32_1 = arith.constant 0 : i32
    return %c0_i32, %c0_i32_0 : i32, i32
  }
}

</mosaic_0001>

<bundles_post_ra>
// kernel: tpu_custom_call.1
= control target key start
LH: loop header
LB: loop body
LE: loop exit
PB: predicated region body
PF: predicated region fallthrough
CT: control target
= control target key end

     0   :  { %9 = vsyncpa [#allocation7], 0  ;;  %s601_s15 = smov 0   ;;  %s674_s0 = inlined_call_operand.vmem [shape: f32[16,8], index: 0, kind: input, shape index: {}]   ;;  %s675_s1 = inlined_call_operand.vmem [shape: s32[16,1], index: 1, kind: input, shape index: {}]   ;;  %s676_s2 = inlined_call_operand.vmem [shape: f32[16,8], index: 2, kind: input, shape index: {}]   ;;  %s677_s3 = inlined_call_operand.vmem [shape: f32[1,8], index: 3, kind: input, shape index: {}]   ;;  %s678_s4 = inlined_call_operand.hbm [shape: f32[1,1], index: 4, kind: output, shape index: {}]  }
   0x1 LB: > { %s607_s16 = sadd.s32 4294967295, %s567_s15   ;;  %p467_p0 = scmp.ge.s32.totalorder %s567_s15, 1  ;;  %s567_s15 = sphi %s601_s15, %s15_s15  }
   0x2   : > { %p175_p1 = scmp.lt.s32.totalorder %s567_s15, 3 }
   0x4   : > { %p176_p2 = pnand %p467_p0, %p175_p1 }
   0x5   : > { %p203_p3 = scmp.lt.s32.totalorder (!%p176_p2), %s607_s16, 1  ;;  %p471_p4 = scmp.ne.s32.totalorder (!%p176_p2), %s607_s16, 0 }
   0x6   : > { %179 = sbr.rel (%p176_p2) target bundleno = 685 (0x2ad), region = 36 }
   0xb   : > { %s204_s17 = scalar_select %p203_p3, %s607_s16, 1 }
   0xc   : > { %218 = sbr.rel (%p471_p4) target bundleno = 23 (0x17), region = 40 }
   0xd   : > { %s613_s18 = sshll.u32 %s204_s17, 3 }
   0xe   : > { %s206_s21 = scalar_lea.vmem %s674_s0, %s613_s18  ;;  %s210_s24 = scalar_lea.vmem %s675_s1, %s613_s18 }
   0xf   : > { %s214_s27 = scalar_lea.vmem %s676_s2, %s613_s18 }
  0x11   : > { %vm219_vm0 = vcmask 0   ;;  %vm221_vm1 = vcmask 57344   ;;  %v569_v0 = vmov 0.0   ;;  %v570_v1 = vmov -1e+30  }
  0x12   : > { %220 = vst.msk [vmem:[#allocation6] sm:$0x1] %vm219_vm0, %v569_v0 }
  0x13   : > { %222 = vst.msk [vmem:[#allocation2] sm:$0x1] %vm221_vm1, %v570_v1 }
  0x14   : > { %223 = vst.msk [vmem:[#allocation3] sm:$0x1] %vm221_vm1, %v569_v0 }
  0x15   : > { %224 = vst.msk [vmem:[#allocation4] sm:$0x1] %vm221_vm1, %v570_v1 }
  0x16   : > { %225 = vst.msk [vmem:[#allocation5] sm:$0x1] %vm221_vm1, %v569_v0 }
  0x17 PF: > { %s472_s28 = sshll.u32 %s607_s16, 3  ;;  %v230_v2 = vlaneseq  ;;  %v228_v4 = vld [vmem:[%s214_s27] sm:$0xff]  ;;  %v571_v6 = vmov 0   ;;  %vm238_vm2 = vcmask 64512   ;;  %vm317_vm5 = vcmask 57344   ;;  %p474_p5 = scmp.ne.s32.totalorder %s607_s16, 1 }
  0x18   : > { %v232_v3 = vstv %s472_s28  ;;  %508 = vset.pattern.permute.xlu0 %v571_v6  ;;  %v226_v7 = vld [vmem:[%s206_s21] sm:$0xff]  ;;  %vm320_vm3 = vcmp.gt.f32.partialorder %v228_v4, 0.0  ;;  %vm265_vm7 = vcmask 7168   ;;  %vm288_vm9 = vcmask 0  }
  0x19   : > { %v231_v5 = vshrl.u32 %v230_v2, 7  ;;  %v227_v27 = vld [vmem:[%s210_s24] sm:$0xff]  ;;  %v252_v6 = vand.u32 127, %v230_v2 }
  0x1a   : > { %v296_v30 = vld [vmem:[#allocation2] sm:$0x1] }
  0x1b   : > { %v630_v8 = vadd.s32 %v232_v3, %v231_v5  ;;  %v298_v58 = vld [vmem:[#allocation3] sm:$0x1] }
  0x1c   : > { %v329_v18 = vld [vmem:[#allocation4] sm:$0x1] }
  0x1d   : > { %vm234_vm4 = vcmp.lt.s32.totalorder %v630_v8, 12  ;;  %v331_v45 = vld [vmem:[#allocation5] sm:$0x1]  ;;  %v276_v8 = vld [vmem:[#allocation6] sm:$0x1] }
  0x1e   : > { %v635_v9 = vsel %vm234_vm4, %v226_v7, -1e+30 }
  0x1f   : > { %v239_v10 = vsel %vm238_vm2, %v635_v9, -inf  ;;  %v321_v11 = vsel %vm320_vm3, %v635_v9, -1e+30 }
  0x20   : > { %v322_v12 = vsel %vm238_vm2, %v321_v11, -inf  ;;  %240 = vmax.xlane.f32.xlu0 %v239_v10  ;;  %v290_v20 = vrot.slane %v239_v10, 4 }
  0x21   : > { %v323_v13 = vrot.slane %v322_v12, 4 }
  0x22   : > { %v291_v22 = vmax.f32 %v239_v10, %v290_v20  ;;  %v572_v10 = vmov 0.0  }
  0x23   : > { %v324_v14 = vmax.f32 %v322_v12, %v323_v13 }
  0x24   : > { %v292_v24 = vrot.slane %v291_v22, 2 }
  0x25   : > { %v325_v15 = vrot.slane %v324_v14, 2 }
  0x26   : > { %v293_v26 = vmax.f32 %v291_v22, %v292_v24 }
  0x27   : > { %v326_v16 = vmax.f32 %v324_v14, %v325_v15 }
  0x28   : > { %v294_v29 = vrot.slane %v293_v26, 1 }
  0x29   : > { %v327_v17 = vrot.slane %v326_v16, 1 }
  0x2a   : > { %v295_v32 = vmax.f32 %v293_v26, %v294_v29 }
  0x2b   : > { %v328_v19 = vmax.f32 %v326_v16, %v327_v17 }
  0x2c   : > { %v297_v33 = vmax.f32 %v296_v30, %v295_v32 }
  0x2d   : > { %v330_v21 = vmax.f32 %v329_v18, %v328_v19 }
  0x2e   : > { %v304_v35 = vperm.slane %v297_v33, 0  ;;  %319 = vst.msk [vmem:[#allocation2] sm:$0x1] %vm317_vm5, %v297_v33  ;;  %v299_v41 = vsub.f32 %v296_v30, %v297_v33 }
  0x2f   : > { %v337_v23 = vperm.slane %v330_v21, 0  ;;  %351 = vst.msk [vmem:[#allocation4] sm:$0x1] %vm317_vm5, %v330_v21  ;;  %v332_v31 = vsub.f32 %v329_v18, %v330_v21  ;;  %v573_v21 = vmov 12.0  }
  0x30   : > { %v306_v37 = vsub.f32 %v635_v9, %v304_v35  ;;  %v300_v46 = vmul.f32 1.442695, %v299_v41 }
  0x31   : > { %v339_v25 = vsub.f32 %v321_v11, %v337_v23  ;;  %v333_v34 = vmul.f32 1.442695, %v332_v31 }
  0x32   : > { %v307_v40 = vmul.f32 1.442695, %v306_v37 }
  0x33   : > { %v340_v28 = vmul.f32 1.442695, %v339_v25 }
  0x34   : > { %254 = vperm.xlu0 %508, %v227_v27  }
  0x35   : > { %509 = vpow2.f32 %v340_v28 }
  0x36   : > { %511 = vpow2.f32 %v333_v34 }
  0x37   : > { %513 = vpow2.f32 %v307_v40 }
  0x38   : > { %515 = vpow2.f32 %v300_v46 }
  0x3b   : > { %v510_v36 = vpop.eup %509 }
  0x3c   : > { %v342_v38 = vsel %vm238_vm2, %v510_v36, 0.0  ;;  %v512_v44 = vpop.eup %511 }
  0x3d   : > { %v343_v39 = vrot.slane %v342_v38, 4  ;;  %v514_v48 = vpop.eup %513  ;;  %v335_v49 = vmul.f32 %v512_v44, %v331_v45 }
  0x3e   : > { %v309_v51 = vsel %vm238_vm2, %v514_v48, 0.0  ;;  %v516_v57 = vpop.eup %515 }
  0x3f   : > { %v344_v42 = vadd.f32 %v343_v39, %v342_v38  ;;  %v310_v53 = vrot.slane %v309_v51, 4  ;;  %v302_v60 = vmul.f32 %v516_v57, %v298_v58 }
  0x41   : > { %v345_v43 = vrot.slane %v344_v42, 2  ;;  %v311_v55 = vadd.f32 %v310_v53, %v309_v51 }
  0x43   : > { %v346_v47 = vadd.f32 %v345_v43, %v344_v42  ;;  %v312_v56 = vrot.slane %v311_v55, 2 }
  0x45   : > { %v347_v50 = vrot.slane %v346_v47, 1  ;;  %v313_v59 = vadd.f32 %v312_v56, %v311_v55 }
  0x47   : > { %v348_v52 = vadd.f32 %v347_v50, %v346_v47  ;;  %v314_v61 = vrot.slane %v313_v59, 1 }
  0x49   : > { %v349_v54 = vadd.f32 %v348_v52, %v335_v49  ;;  %v315_v62 = vadd.f32 %v314_v61, %v313_v59 }
  0x4b   : > { %350 = vst.msk [vmem:[#allocation5] sm:$0x1] %vm317_vm5, %v349_v54  ;;  %v316_v63 = vadd.f32 %v315_v62, %v302_v60 }
  0x4d   : > { %318 = vst.msk [vmem:[#allocation3] sm:$0x1] %vm317_vm5, %v316_v63 }
  0x93   : > { %v241_v0 = vpop.xlane.xlu0 %240 }
  0x94   : > { %v242_v1 = vsub.f32 %v635_v9, %v241_v0 }
  0x96   : > { %v243_v3 = vmul.f32 1.442695, %v242_v1 }
  0x98   : > { %517 = vpow2.f32 %v243_v3 }
  0x9e   : > { %v518_v4 = vpop.eup %517 }
  0x9f   : > { %v245_v5 = vsel %vm238_vm2, %v518_v4, 0.0 }
  0xa0   : > { %246 = vadd.xlane.f32.xlu1 %v245_v5 }
  0xa6   : > { %v255_v7 = vpop.permute.xlu0 %254 }
  0xa7   : > { %vm256_vm6 = vcmp.eq.s32.totalorder %v252_v6, %v255_v7 }
  0xa8   : > { %v473_v11 = vsel %vm256_vm6, 1.0, %v572_v10 }
  0xa9   : > { %v259_v12 = vmul.f32 %v473_v11, %v635_v9 }
  0xab   : > { %v260_v13 = vsel %vm238_vm2, %v259_v12, 0.0 }
  0xac   : > { %261 = vadd.xlane.f32.xlu1 %v260_v13 }
 0x113   : > { %v247_v14 = vpop.xlane.xlu1 %246 }
 0x114   : > { %519 = vlog2.f32 %v247_v14 }
 0x115   : > { %521 = vrcp.f32 %v573_v21 }
 0x11a   : > { %v520_v15 = vpop.eup %519 }
 0x11b   : > { %v249_v16 = vmul.f32 0.6931472, %v520_v15  ;;  %v522_v22 = vpop.eup %521 }
 0x11c   : > { %v278_v9 = vmul.f32 12.0, %v522_v22  ;;  %vm282_vm8 = vweird.f32 %v522_v22 }
 0x11d   : > { %v250_v17 = vadd.f32 %v249_v16, %v241_v0 }
 0x11e   : > { %v279_v23 = vsub.f32 1.0, %v278_v9 }
 0x11f   : > { %v262_v18 = vpop.xlane.xlu1 %261 }
 0x120   : > { %v263_v19 = vsub.f32 %v250_v17, %v262_v18  ;;  %v280_v27 = vmul.f32 %v522_v22, %v279_v23 }
 0x122   : > { %v264_v2 = vsel %vm234_vm4, %v263_v19, 0.0  ;;  %v281_v30 = vadd.f32 %v522_v22, %v280_v27 }
 0x123   : > { %v266_v20 = vsel %vm265_vm7, %v264_v2, 0.0 }
 0x124   : > { %267 = vadd.xlane.f32.xlu2 %v266_v20  ;;  %v283_v33 = vsel %vm282_vm8, %v522_v22, %v281_v30 }
 0x197   : > { %v268_v24 = vpop.xlane.xlu2 %267 }
 0x198   : > { %v269_v25 = vrot.slane %v268_v24, 4 }
 0x19a   : > { %v270_v26 = vadd.f32 %v269_v25, %v268_v24 }
 0x19c   : > { %v271_v28 = vrot.slane %v270_v26, 2 }
 0x19e   : > { %v272_v29 = vadd.f32 %v271_v28, %v270_v26 }
 0x1a0   : > { %v273_v31 = vrot.slane %v272_v29, 1 }
 0x1a2   : > { %v274_v32 = vadd.f32 %v273_v31, %v272_v29 }
 0x1a4   : > { %479 = vpush %v274_v32 }
 0x1a5   : > { %481 = vpush %v283_v33 }
 0x1d5   : > { %s480_s5 = spop %479 }
 0x1d6   : > { %s482_s6 = spop %481 }
 0x1d7   : > { %s285_s7 = smul.f32 %s482_s6, %s480_s5 }
 0x1d8   : > { %355 = sbr.rel (%p474_p5) target bundleno = 680 (0x2a8), region = 44 }
 0x1d9   : > { %v286_v34 = vstv %s285_s7 }
 0x1da   : > { %v287_v35 = vadd.f32 %v286_v34, %v276_v8 }
 0x1dc   : > { %289 = vst.msk [vmem:[#allocation6] sm:$0x1] %vm288_vm9, %v287_v35 }
 0x1dd   : > { %v357_v36 = vld [vmem:[#allocation3] sm:$0x1]  ;;  %v362_v37 = vld [vmem:[#allocation5] sm:$0x1]  ;;  %v356_v39 = vld [vmem:[#allocation2] sm:$0x1] }
 0x1de   : > { %523 = vlog2.f32 %v357_v36  ;;  %v361_v42 = vld [vmem:[#allocation4] sm:$0x1]  ;;  %v366_v46 = vld [vmem:[%s677_s3] sm:$0x1]  ;;  %v574_v50 = vmov 8.0  }
 0x1df   : > { %525 = vlog2.f32 %v362_v37 }
 0x1e0   : > { %527 = vrcp.f32 %v574_v50 }
 0x1e3   : > { %v379_v0 = vld [vmem:[#allocation6] sm:$0x1] }
 0x1e4   : > { %v524_v38 = vpop.eup %523 }
 0x1e5   : > { %v526_v40 = vpop.eup %525  ;;  %v359_v41 = vmul.f32 0.6931472, %v524_v38 }
 0x1e6   : > { %v364_v43 = vmul.f32 0.6931472, %v526_v40  ;;  %v528_v51 = vpop.eup %527 }
 0x1e7   : > { %v360_v44 = vadd.f32 %v359_v41, %v356_v39  ;;  %v381_v52 = vmul.f32 8.0, %v528_v51  ;;  %vm385_vm10 = vweird.f32 %v528_v51 }
 0x1e8   : > { %v365_v45 = vadd.f32 %v364_v43, %v361_v42 }
 0x1e9   : > { %v382_v53 = vsub.f32 1.0, %v381_v52 }
 0x1ea   : > { %v367_v47 = vsub.f32 %v360_v44, %v365_v45 }
 0x1eb   : > { %v383_v57 = vmul.f32 %v528_v51, %v382_v53 }
 0x1ec   : > { %v368_v48 = vmul.f32 %v367_v47, %v366_v46 }
 0x1ed   : > { %v384_v60 = vadd.f32 %v528_v51, %v383_v57 }
 0x1ee   : > { %v369_v49 = vsel %vm317_vm5, %v368_v48, 0.0 }
 0x1ef   : > { %370 = vadd.xlane.f32.xlu0 %v369_v49  ;;  %v386_v63 = vsel %vm385_vm10, %v528_v51, %v384_v60 }
 0x262   : > { %v371_v54 = vpop.xlane.xlu0 %370 }
 0x263   : > { %v372_v55 = vrot.slane %v371_v54, 4 }
 0x265   : > { %v373_v56 = vadd.f32 %v372_v55, %v371_v54 }
 0x267   : > { %v374_v58 = vrot.slane %v373_v56, 2 }
 0x269   : > { %v375_v59 = vadd.f32 %v374_v58, %v373_v56 }
 0x26b   : > { %v376_v61 = vrot.slane %v375_v59, 1 }
 0x26d   : > { %v377_v62 = vadd.f32 %v376_v61, %v375_v59 }
 0x26f   : > { %483 = vpush %v377_v62 }
 0x270   : > { %485 = vpush %v386_v63 }
 0x2a0   : > { %s484_s10 = spop %483 }
 0x2a1   : > { %s486_s11 = spop %485 }
 0x2a2   : > { %s388_s12 = smul.f32 %s486_s11, %s484_s10 }
 0x2a4   : > { %v389_v1 = vstv %s388_s12 }
 0x2a5   : > { %v390_v3 = vadd.f32 %v389_v1, %v379_v0 }
 0x2a7   : > { %391 = vst.msk [vmem:[#allocation6] sm:$0x1] %vm288_vm9, %v390_v3 }
 0x2a8 PF: > { %p491_p6 = scmp.eq.s32.totalorder %s607_s16, 1  ;;  %s575_s13 = smov [#allocation6]  }
 0x2a9   : > { %s398_s14 = sshll.u32 %s575_s13, 4  ;;  %s400_s19 = sshll.u32 %s678_s4, 4  ;;  %s399_s14 = int_to_ptr.vmem [resolvable:$true] %s398_s14  ;;  %s401_s19 = int_to_ptr.hbm [resolvable:$true] %s400_s19 }
 0x2aa   : > { %488 = dma.vmem_to_hbm [thread:$0]  (%p491_p6), %s399_s14, 16, %s401_s19, [#allocation7]  }
 0x2ab   : > { %562 = dma.done.wait (%p491_p6), [#allocation7], 16  }
 0x2ac   : > { %564 = vsyncadd (%p491_p6), [#allocation7], 4294967280 }
 0x2ad PF: > { %s15_s15 = sadd.s32 1, %s567_s15  }
 0x2ae   : > { %p12_p7 = scmp.ge.s32.totalorder %s15_s15, 4  }
 0x2b0   :  { %14 = sbr.rel (!%p12_p7) target bundleno = 1 (0x1), region = 77 }
 0x2b5   :  { %414 = vsyncpa [#allocation7], 1 }
 0x2b6   :  { %416 = vsyncpa [#allocation7 + $0x1], 1 }

</bundles_post_ra>
